<compile_context>
chip_gen: v6e
topology: v6e:2x2x1
jax: 0.10.0
libtpu: 0.0.40
codegen_flags: <defaults>
</compile_context>

<pallas_src>
import jax
import jax.numpy as jnp
from jax import lax
from jax.experimental import pallas as pl
from jax.experimental.pallas import tpu as pltpu


def _round_up(a, m):
    return (a + m - 1) // m * m


# ----------------------------------------------------------------------------
# Packed-parameter layout (single resident VMEM buffer)
# ----------------------------------------------------------------------------
def _packed_layout(input_size, hidden_units):
    """Row offsets of each layer inside the packed parameter buffer.

    Layer l occupies rows [off, off+out) laid out as [W (out,in) | bias col].
    Every segment starts on a multiple of 8 rows (sublane alignment).
    """
    row_offsets = []
    off = 0
    ncols = 1
    in_dim = input_size
    for out_dim in hidden_units:
        row_offsets.append(off)
        ncols = max(ncols, in_dim + 1)        # [W | b]
        off += _round_up(out_dim, 8)
        in_dim = out_dim
    return _round_up(off, 8), ncols, tuple(row_offsets)


def pack_params(params, input_size, hidden_units):
    nrows, ncols, row_offsets = _packed_layout(input_size, hidden_units)
    P = jnp.zeros((nrows, ncols), jnp.float32)
    in_dim = input_size
    for l, out_dim in enumerate(hidden_units):
        w = params[f"w{l + 1}"].astype(jnp.float32)   # (out, in), PyTorch layout
        b = params[f"b{l + 1}"].astype(jnp.float32)   # (out,)
        off = row_offsets[l]
        P = P.at[off:off + out_dim, 0:in_dim].set(w)
        P = P.at[off:off + out_dim, in_dim].set(b)
        in_dim = out_dim
    return P, row_offsets


# ----------------------------------------------------------------------------
# Fused MLP kernel: whole network for one lane-dense batch tile per grid step
# ----------------------------------------------------------------------------
def _make_mlp_kernel(input_size, hidden_units, row_offsets):
    n_layers = len(hidden_units)

    def kernel(p_ref, xT_ref, oT_ref):
        # Upcast right after the DMA (no-op for f32 inputs): all VPU/MXU math
        # is f32 with explicit HIGHEST matmul precision to match the PyTorch
        # f32 reference regardless of backend default-precision lowering.
        act = xT_ref[...].astype(jnp.float32)          # (in_dim, TB), batch on lanes
        in_dim = input_size
        for l, out_dim in enumerate(hidden_units):
            off = row_offsets[l]
            w = p_ref[off:off + out_dim, 0:in_dim]                 # (out, in)
            bias = p_ref[off:off + out_dim, in_dim:in_dim + 1]     # (out, 1)
            # All layers on the MXU: K=3 (layer 1) and M=1 (layer 3) pad for
            # free inside an MXU pass and the MXU/vex slot has large slack.
            h = jnp.dot(w, act,
                        preferred_element_type=jnp.float32,
                        precision=lax.Precision.HIGHEST) + bias    # (out, TB)
            act = h if l == n_layers - 1 else jnp.maximum(h, 0.0)
            in_dim = out_dim
        oT_ref[...] = act.astype(oT_ref.dtype)

    return kernel


# ----------------------------------------------------------------------------
# Wrapper
# ----------------------------------------------------------------------------
def mlp_forward(x, params, *, input_size=3, hidden_units=(20, 30, 1),
                block_batch=4096, x_dma_dtype=jnp.float32):
    """Forward pass.  x: (B, input_size) f32 -> (B, hidden_units[-1]) f32.

    x_dma_dtype=jnp.bfloat16 halves input DMA bytes (kernel math stays f32).
    """
    B = x.shape[0]
    out_dim = hidden_units[-1]

    # Batch tile: multiple of 128 lanes.  Cap so there are always >= 2 tiles
    # when the batch spans more than one 128-lane tile, keeping both v7x
    # TensorCores busy via the ("parallel",) grid axis.
    TB_req = _round_up(block_batch, 128)
    TB_full = _round_up(B, 128)
    TB_cap = _round_up(-(-B // 2), 128) if TB_full > 128 else 128
    TB = max(128, min(TB_req, TB_full, TB_cap))
    B_pad = _round_up(B, TB)
    n_tiles = B_pad // TB

    packed, row_offsets = pack_params(params, input_size, hidden_units)

    # Lane-dense, transposed activations: (features, padded batch).  With
    # allow_input_fusion this pad/cast/transpose can fuse into the pallas-call
    # operand instead of costing a separate HBM round-trip.
    xT = jnp.pad(x.astype(x_dma_dtype), ((0, B_pad - B), (0, 0))).T

    in_dims = (input_size,) + tuple(hidden_units[:-1])
    macs = sum(i * o for i, o in zip(in_dims, hidden_units))
    in_bytes = int(jnp.dtype(x_dma_dtype).itemsize)
    cost = pl.CostEstimate(
        flops=2 * B_pad * macs,
        transcendentals=0,
        bytes_accessed=(in_bytes * input_size * B_pad
                        + 4 * int(packed.size)
                        + 4 * out_dim * B_pad),
    )

    kernel = _make_mlp_kernel(input_size, hidden_units, row_offsets)

    outT = pl.pallas_call(
        kernel,
        out_shape=jax.ShapeDtypeStruct((out_dim, B_pad), jnp.float32),
        grid=(n_tiles,),
        in_specs=[
            # Packed params: constant index map -> DMA'd once, resident in VMEM.
            pl.BlockSpec(packed.shape, lambda i: (0, 0)),
            # x tile: lane-dense (features, TB) slab per grid step.
            pl.BlockSpec((input_size, TB), lambda i: (0, i)),
        ],
        out_specs=pl.BlockSpec((out_dim, TB), lambda i: (0, i)),
        compiler_params=pltpu.CompilerParams(
            dimension_semantics=("parallel",),
            allow_input_fusion=[False, True],
        ),
        cost_estimate=cost,
    )(packed, xT)

    # Back to PyTorch layout (B, out_features); drop batch padding.  out_dim==1
    # needs only a reshape (no transpose pass).
    out = outT[:, :B]
    return out.reshape(B, out_dim) if out_dim == 1 else out.T


# ----------------------------------------------------------------------------
# Deterministic parameter init (mirrors NeuralNetwork.__init__):
#   sigma_theta^2 ~ InverseGamma(a_theta, b_theta); weights/biases ~ N(0, sigma)
# Weights kept in PyTorch layout (out_features, in_features).
# ----------------------------------------------------------------------------
def init_params(key, input_size=3, hidden_unit_list=(20, 30, 1),
                a_theta=2.0, b_theta=1.0):
    key, k_sigma = jax.random.split(key)
    sigma_theta = jnp.sqrt(b_theta / jax.random.gamma(k_sigma, a_theta))
    params = {}
    in_dim = input_size
    for i, units in enumerate(hidden_unit_list):
        key, kw, kb = jax.random.split(key, 3)
        params[f"w{i + 1}"] = sigma_theta * jax.random.normal(
            kw, (units, in_dim), jnp.float32)
        params[f"b{i + 1}"] = sigma_theta * jax.random.normal(
            kb, (units,), jnp.float32)
        in_dim = units
    return params


# ----------------------------------------------------------------------------
# Pure-JAX reference (PyTorch semantics: x @ W.T + b, f32 accumulation)
# ----------------------------------------------------------------------------
def mlp_reference(x, params, n_layers):
    h = x
    for i in range(1, n_layers + 1):
        h = jnp.dot(h, params[f"w{i}"].T,
                    precision=lax.Precision.HIGHEST) + params[f"b{i}"]
        if i < n_layers:
            h = jnp.maximum(h, 0.0)
    return h


if __name__ == "__main__":
    key = jax.random.PRNGKey(0)
    key, k_init, k_x1, k_x2 = jax.random.split(key, 4)

    input_size = 3
    hidden_unit_list = (20, 30, 1)
    n_layers = len(hidden_unit_list)

    params = init_params(k_init, input_size, hidden_unit_list,
                         a_theta=2.0, b_theta=1.0)

    # Small batch (single grid step after padding to one 128-lane tile).
    x_small = jax.random.normal(k_x1, (8, input_size), jnp.float32)
    out_small = jax.block_until_ready(
        mlp_forward(x_small, params,
                    input_size=input_size, hidden_units=hidden_unit_list))
    ref_small = mlp_reference(x_small, params, n_layers)
    assert out_small.shape == (8, hidden_unit_list[-1]), out_small.shape
    assert jnp.allclose(out_small, ref_small, atol=1e-4, rtol=1e-4)

    # Non-multiple batch; TB cap forces a 2-tile parallel grid (exercises
    # padding, resident params across steps, and megacore batch sharding).
    x_big = jax.random.normal(k_x2, (300, input_size), jnp.float32)
    out_big = jax.block_until_ready(
        mlp_forward(x_big, params,
                    input_size=input_size, hidden_units=hidden_unit_list))
    ref_big = mlp_reference(x_big, params, n_layers)
    assert out_big.shape == (300, hidden_unit_list[-1]), out_big.shape
    assert jnp.allclose(out_big, ref_big, atol=1e-4, rtol=1e-4)

    # Optional bf16 input-DMA path (half the input bytes, f32 math in-kernel).
    out_bf16 = jax.block_until_ready(
        mlp_forward(x_big, params,
                    input_size=input_size, hidden_units=hidden_unit_list,
                    x_dma_dtype=jnp.bfloat16))
    ref_bf16 = mlp_reference(
        x_big.astype(jnp.bfloat16).astype(jnp.float32), params, n_layers)
    assert jnp.allclose(out_bf16, ref_bf16, atol=1e-3, rtol=1e-3)

    print("KERNEL_OK")
</pallas_src>

<mosaic_0001>
module attributes {stable_mosaic.version = 11 : i64} {
  func.func @kernel(%arg0: i32, %arg1: memref<64x31xf32, #tpu.memory_space<vmem>>, %arg2: memref<3x128xf32, #tpu.memory_space<vmem>>, %arg3: memref<1x128xf32, #tpu.memory_space<vmem>>) attributes {dimension_semantics = [#tpu.dimension_semantics<parallel>], iteration_bounds = array<i64: 1>, scalar_prefetch = 0 : i64, scratch_operands = 0 : i64, tpu.core_type = #tpu.core_type<tc>, window_params = [{pipeline_mode = #tpu.pipeline_mode<synchronous>, transform_indices = @transform_0, window_bounds = array<i64: 64, 31>}, {transform_indices = @transform_1, window_bounds = array<i64: 3, 128>}, {transform_indices = @transform_2, window_bounds = array<i64: 1, 128>}]} {
    %c0 = arith.constant 0 : index
    %c0_0 = arith.constant 0 : index
    %0 = vector.load %arg2[%c0, %c0_0] : memref<3x128xf32, #tpu.memory_space<vmem>>, vector<3x128xf32>
    %c0_1 = arith.constant 0 : index
    %c0_2 = arith.constant 0 : index
    %1 = vector.load %arg1[%c0_1, %c0_2] : memref<64x31xf32, #tpu.memory_space<vmem>>, vector<20x3xf32>
    %c0_3 = arith.constant 0 : index
    %c3 = arith.constant 3 : index
    %2 = vector.load %arg1[%c0_3, %c3] : memref<64x31xf32, #tpu.memory_space<vmem>>, vector<20x1xf32>
    %cst = arith.constant dense<0.000000e+00> : vector<20x128xf32>
    %3 = tpu.matmul %1, %0, %cst {dimension_numbers = #tpu.dot_dimension_numbers<[1], [0], [0], [1], [0, 0, 1, 1], [], []>, precision = #tpu.contract_precision<fp32>} : vector<20x3xf32>, vector<3x128xf32>, vector<20x128xf32> -> vector<20x128xf32>
    %4 = vector.broadcast %2 : vector<20x1xf32> to vector<20x128xf32>
    %5 = arith.addf %3, %4 : vector<20x128xf32>
    %cst_4 = arith.constant 0.000000e+00 : f32
    %6 = vector.broadcast %cst_4 : f32 to vector<20x128xf32>
    %7 = arith.maximumf %5, %6 : vector<20x128xf32>
    %c24 = arith.constant 24 : index
    %c0_5 = arith.constant 0 : index
    %8 = vector.load %arg1[%c24, %c0_5] : memref<64x31xf32, #tpu.memory_space<vmem>>, vector<30x20xf32>
    %c24_6 = arith.constant 24 : index
    %c20 = arith.constant 20 : index
    %9 = vector.load %arg1[%c24_6, %c20] : memref<64x31xf32, #tpu.memory_space<vmem>>, vector<30x1xf32>
    %cst_7 = arith.constant dense<0.000000e+00> : vector<30x128xf32>
    %10 = tpu.matmul %8, %7, %cst_7 {dimension_numbers = #tpu.dot_dimension_numbers<[1], [0], [0], [1], [0, 0, 1, 1], [], []>, precision = #tpu.contract_precision<fp32>} : vector<30x20xf32>, vector<20x128xf32>, vector<30x128xf32> -> vector<30x128xf32>
    %11 = vector.broadcast %9 : vector<30x1xf32> to vector<30x128xf32>
    %12 = arith.addf %10, %11 : vector<30x128xf32>
    %cst_8 = arith.constant 0.000000e+00 : f32
    %13 = vector.broadcast %cst_8 : f32 to vector<30x128xf32>
    %14 = arith.maximumf %12, %13 : vector<30x128xf32>
    %c56 = arith.constant 56 : index
    %c0_9 = arith.constant 0 : index
    %15 = vector.load %arg1[%c56, %c0_9] : memref<64x31xf32, #tpu.memory_space<vmem>>, vector<1x30xf32>
    %c56_10 = arith.constant 56 : index
    %c30 = arith.constant 30 : index
    %16 = vector.load %arg1[%c56_10, %c30] : memref<64x31xf32, #tpu.memory_space<vmem>>, vector<1x1xf32>
    %cst_11 = arith.constant dense<0.000000e+00> : vector<1x128xf32>
    %17 = tpu.matmul %15, %14, %cst_11 {dimension_numbers = #tpu.dot_dimension_numbers<[1], [0], [0], [1], [0, 0, 1, 1], [], []>, precision = #tpu.contract_precision<fp32>} : vector<1x30xf32>, vector<30x128xf32>, vector<1x128xf32> -> vector<1x128xf32>
    %18 = vector.broadcast %16 : vector<1x1xf32> to vector<1x128xf32>
    %19 = arith.addf %17, %18 : vector<1x128xf32>
    %c0_12 = arith.constant 0 : index
    %c0_13 = arith.constant 0 : index
    %20 = vector.load %arg3[%c0_12, %c0_13] : memref<1x128xf32, #tpu.memory_space<vmem>>, vector<1x128xf32>
    tpu.vector_store %arg3[%c0_12, %c0_13], %19 {strides = array<i32>} : memref<1x128xf32, #tpu.memory_space<vmem>>, vector<1x128xf32>,
    return
  }
  func.func @transform_0(%arg0: i32) -> (i32, i32) {
    %c0_i32 = arith.constant 0 : i32
    %c0_i32_0 = arith.constant 0 : i32
    %c0_i32_1 = arith.constant 0 : i32
    return %c0_i32, %c0_i32_0 : i32, i32
  }
  func.func @transform_1(%arg0: i32) -> (i32, i32) {
    %c0_i32 = arith.constant 0 : i32
    %c0_i32_0 = arith.constant 0 : i32
    return %c0_i32, %arg0 : i32, i32
  }
  func.func @transform_2(%arg0: i32) -> (i32, i32) {
    %c0_i32 = arith.constant 0 : i32
    %c0_i32_0 = arith.constant 0 : i32
    return %c0_i32, %arg0 : i32, i32
  }
}

</mosaic_0001>

<bundles_post_ra>
// kernel: tpu_custom_call.1
= control target key start
LH: loop header
LB: loop body
LE: loop exit
PB: predicated region body
PF: predicated region fallthrough
CT: control target
= control target key end

     0   :  { %vm38_vm0 = vcmask 1042432   ;;  %v2065_v2 = vmov 0.0   ;;  %vm2066_vm1 = vmmov 0   ;;  %vm31_vm2 = vcmask 23552   ;;  %s2329_s0 = inlined_call_operand.vmem [shape: f32[64,31], index: 0, kind: input, shape index: {}]   ;;  %s2330_s1 = inlined_call_operand.vmem [shape: f32[3,128], index: 1, kind: input, shape index: {}]   ;;  %s2331_s2 = inlined_call_operand.hbm [shape: f32[1,128], index: 2, kind: output, shape index: {}]  }
   0x1   :  { %v12_v0 = vld [vmem:[%s2330_s1] sm:$0x7]  ;;  %1828 = vmatprep.subr.mxu0 %v2065_v2  ;;  %1830 = vmatprep.mubr.msk.f32.mxu0 %vm2066_vm1, %v2065_v2  ;;  %v14_v4 = vld [vmem:[%s2329_s0 + $0x8] sm:$0xff]  ;;  %v15_v5 = vld [vmem:[%s2329_s0 + $0x10] sm:$0xf] }
   0x2   :  { %v13_v1 = vld [vmem:[%s2329_s0] sm:$0xff]  ;;  %v40_v3 = vsel %vm38_vm0, %v12_v0, 0  ;;  %1839 = vmatprep.subr.mxu1 %v2065_v2  ;;  %1841 = vmatprep.mubr.msk.f32.mxu1 %vm2066_vm1, %v2065_v2  ;;  %v34_v8 = vsel %vm31_vm2, %v14_v4, 0  ;;  %v36_v9 = vsel %vm31_vm2, %v15_v5, 0 }
   0x3   :  { %v73_v6 = vand.u32 4294901760, %v40_v3  ;;  %v32_v7 = vsel %vm31_vm2, %v13_v1, 0 }
   0x4   :  { %7 = vsyncpa [#allocation3], 0  ;;  %v108_v10 = vand.u32 4294901760, %v32_v7  ;;  %v118_v11 = vand.u32 4294901760, %v34_v8  ;;  %v2104_v12 = vand.u32 4294901760, %v36_v9  ;;  %v2067_v13 = vmov 3  }
   0x5   :  { %2039 = vset.pattern.permute.xlu1 %v2067_v13  ;;  %2038 = vset.pattern.permute.xlu0 %v2067_v13  ;;  %v170_v14 = vsub.f32 %v40_v3, %v73_v6  ;;  %v577_v30 = vld [vmem:[%s2329_s0 + $0x18] sm:$0xff]  ;;  %vm601_vm3 = vcmask 162816   ;;  %v578_v32 = vld [vmem:[%s2329_s0 + $0x20] sm:$0xff]  ;;  %v579_v36 = vld [vmem:[%s2329_s0 + $0x28] sm:$0xff]  ;;  %v2068_v43 = vmov 20   ;;  %vm610_vm4 = vcmask 1043456  }
   0x6   :  { %1829 = vmatpush3.msra.mxu0 %v73_v6  ;;  %28 = vperm.xlu0 %2038, %v15_v5   ;;  %v109_v15 = vsub.f32 %v32_v7, %v108_v10  ;;  %v119_v16 = vsub.f32 %v34_v8, %v118_v11  ;;  %v129_v17 = vsub.f32 %v36_v9, %v2104_v12  ;;  %v602_v31 = vsel %vm601_vm3, %v577_v30, 0  ;;  %v580_v38 = vld [vmem:[%s2329_s0 + $0x30] sm:$0x3f] }
   0x7   :  { %1850 = vmatprep.subr.mxu0 %v2065_v2  ;;  %18 = vperm.xlu1 %2039, %v13_v1   ;;  %v171_v18 = vand.u32 4294901760, %v170_v14  ;;  %v2152_v33 = vand.u32 4294901760, %v602_v31  ;;  %v2154_v34 = vsel %vm601_vm3, %v578_v32, 0  ;;  %v2163_v37 = vsel %vm601_vm3, %v579_v36, 0 }
   0x8   :  { %v110_v19 = vand.u32 4294901760, %v109_v15  ;;  %v120_v20 = vand.u32 4294901760, %v119_v16  ;;  %v130_v24 = vand.u32 4294901760, %v129_v17  ;;  %v2169_v40 = vsel %vm601_vm3, %v580_v38, 0 }
   0x9   :  { %v172_v21 = vsub.f32 %v170_v14, %v171_v18  ;;  %v2157_v35 = vsub.f32 %v602_v31, %v2152_v33  ;;  %vm1225_vm5 = vcmask 244736   ;;  %vm1228_vm6 = vcmask 1045504  }
   0xa   :  { %23 = vperm.xlu0 %2038, %v14_v4   ;;  %v111_v22 = vsub.f32 %v109_v15, %v110_v19  ;;  %v121_v23 = vsub.f32 %v119_v16, %v120_v20  ;;  %v131_v28 = vsub.f32 %v129_v17, %v130_v24 }
   0xb   :  { %v173_v25 = vand.u32 4294901760, %v172_v21  ;;  %v684_v39 = vand.u32 4294901760, %v2157_v35  ;;  %2040 = vset.pattern.permute.xlu1 %v2068_v43 }
   0xc   :  { %v112_v26 = vand.u32 4294901760, %v111_v22  ;;  %v122_v27 = vand.u32 4294901760, %v121_v23  ;;  %v132_v29 = vand.u32 4294901760, %v131_v28  ;;  %598 = vperm.xlu1 %2040, %v580_v38  }
   0xd   :  { %1840 = vmatpush3.msra.mxu1 %v173_v25  ;;  %v685_v41 = vsub.f32 %v2157_v35, %v684_v39 }
   0xe   :  { %1831 = vmatmul.mubr.f32.vlgmr.msra.gmra.mxu0 %v112_v26  ;;  %1842 = vmatmul.mubr.f32.vlgmr.msra.gmra.mxu1 %v108_v10 }
   0xf   :  { %1833 = vmatprep.mubr.msk.f32.mxu0 %vm2066_vm1, %v2065_v2  ;;  %1844 = vmatprep.mubr.msk.f32.mxu1 %vm2066_vm1, %v2065_v2  ;;  %v686_v42 = vand.u32 4294901760, %v685_v41 }
  0x10   :  { %1851 = vmatpush3.msra.mxu0 %v170_v14  ;;  %1861 = vmatprep.subr.mxu1 %v2065_v2 }
  0x11   :  { %1862 = vmatpush3.msra.mxu1 %v73_v6  ;;  %1872 = vmatprep.subr.mxu0 %v2065_v2 }
  0x12   :  { %1834 = vmatmul.mubr.f32.gmra.mxu0 %v122_v27  ;;  %1845 = vmatmul.mubr.f32.gmra.mxu1 %v118_v11  ;;  %v2175_v27 = vand.u32 4294901760, %v2154_v34 }
  0x13   :  { %1836 = vmatprep.mubr.msk.f32.mxu0 %vm2066_vm1, %v2065_v2  ;;  %1847 = vmatprep.mubr.msk.f32.mxu1 %vm2066_vm1, %v2065_v2 }
  0x14   :  { %1883 = vmatprep.subr.mxu1 %v2065_v2  ;;  %2041 = vset.pattern.permute.xlu0 %v2068_v43  ;;  %v2182_v43 = vsub.f32 %v2154_v34, %v2175_v27 }
  0x15   :  { %593 = vperm.xlu0 %2041, %v579_v36   ;;  %588 = vperm.xlu1 %2040, %v578_v32  }
  0x16   :  { %1837 = vmatmul.mubr.f32.gmra.mxu0 %v132_v29  ;;  %1848 = vmatmul.mubr.f32.gmra.mxu1 %v2104_v12  ;;  %v2178_v29 = vand.u32 4294901760, %v2163_v37  ;;  %v694_v34 = vand.u32 4294901760, %v2182_v43 }
  0x17   :  { %1852 = vmatprep.mubr.msk.f32.mxu0 %vm2066_vm1, %v2065_v2  ;;  %1863 = vmatprep.mubr.msk.f32.mxu1 %vm2066_vm1, %v2065_v2 }
  0x19   :  { %583 = vperm.xlu1 %2040, %v577_v30  }
  0x1a   :  { %1853 = vmatmul.mubr.f32.vlgmr.msra.gmra.mxu0 %v109_v15  ;;  %1864 = vmatmul.mubr.f32.vlgmr.msra.gmra.mxu1 %v110_v19 }
  0x1b   :  { %1855 = vmatprep.mubr.msk.f32.mxu0 %vm2066_vm1, %v2065_v2  ;;  %1866 = vmatprep.mubr.msk.f32.mxu1 %vm2066_vm1, %v2065_v2 }
  0x1c   :  { %1873 = vmatpush3.msra.mxu0 %v171_v18  ;;  %1884 = vmatpush3.msra.mxu1 %v73_v6 }
  0x1e   :  { %1856 = vmatmul.mubr.f32.gmra.mxu0 %v119_v16  ;;  %1867 = vmatmul.mubr.f32.gmra.mxu1 %v120_v20 }
  0x1f   :  { %1858 = vmatprep.mubr.msk.f32.mxu0 %vm2066_vm1, %v2065_v2  ;;  %1869 = vmatprep.mubr.msk.f32.mxu1 %vm2066_vm1, %v2065_v2 }
  0x22   :  { %1859 = vmatmul.mubr.f32.gmra.mxu0 %v129_v17  ;;  %1870 = vmatmul.mubr.f32.gmra.mxu1 %v130_v24 }
  0x23   :  { %1874 = vmatprep.mubr.msk.f32.mxu0 %vm2066_vm1, %v2065_v2  ;;  %1885 = vmatprep.mubr.msk.f32.mxu1 %vm2066_vm1, %v2065_v2 }
  0x26   :  { %1875 = vmatmul.mubr.f32.vlgmr.msra.gmra.mxu0 %v108_v10  ;;  %1886 = vmatmul.mubr.f32.vlgmr.msra.gmra.mxu1 %v108_v10 }
  0x27   :  { %1877 = vmatprep.mubr.msk.f32.mxu0 %vm2066_vm1, %v2065_v2  ;;  %1888 = vmatprep.mubr.msk.f32.mxu1 %vm2066_vm1, %v2065_v2 }
  0x2a   :  { %1878 = vmatmul.mubr.f32.gmra.mxu0 %v118_v11  ;;  %1889 = vmatmul.mubr.f32.gmra.mxu1 %v118_v11 }
  0x2b   :  { %1880 = vmatprep.mubr.msk.f32.mxu0 %vm2066_vm1, %v2065_v2  ;;  %1891 = vmatprep.mubr.msk.f32.mxu1 %vm2066_vm1, %v2065_v2 }
  0x2e   :  { %1881 = vmatmul.mubr.f32.gmra.mxu0 %v2104_v12  ;;  %1892 = vmatmul.mubr.f32.gmra.mxu1 %v2104_v12 }
  0x2f   :  { %1912 = vmatprep.mubr.f32.mxu1 %v2152_v33  ;;  %1900 = vmatprep.mubr.f32.mxu0 %v686_v42 }
  0x81   :  { %v29_v52 = vpop.permute.xlu0 %28 }
  0x82   :  { %v19_v55 = vpop.permute.xlu1 %18 }
  0x85   :  { %v24_v61 = vpop.permute.xlu0 %23 }
  0xce   :  { %v114_v44 = vpop.f32.mrf.mxu0  ;;  %v210_v45 = vpop.f32.mrf.mxu1 }
  0xcf   :  { %v115_v60 = vadd.f32 %v114_v44, %v19_v55  ;;  %v2185_v44 = vand.u32 4294901760, %v2169_v40 }
  0xd0   :  { %v1832_v46 = vpop.f32.mrf.mxu0  ;;  %v1843_v47 = vpop.f32.mrf.mxu1 }
  0xd1   :  { %v211_v3 = vadd.f32 %v210_v45, %v115_v60  ;;  %v2189_v47 = vsub.f32 %v2163_v37, %v2178_v29 }
  0xd2   :  { %v124_v48 = vpop.f32.mrf.mxu0  ;;  %v216_v49 = vpop.f32.mrf.mxu1 }
  0xd3   :  { %v125_v4 = vadd.f32 %v124_v48, %v24_v61  ;;  %v704_v55 = vand.u32 4294901760, %v2189_v47 }
  0xd4   :  { %v1835_v50 = vpop.f32.mrf.mxu0  ;;  %v1846_v51 = vpop.f32.mrf.mxu1 }
  0xd5   :  { %v217_v10 = vadd.f32 %v216_v49, %v125_v4 }
  0xd6   :  { %v134_v53 = vpop.f32.mrf.mxu0  ;;  %v222_v54 = vpop.f32.mrf.mxu1 }
  0xd7   :  { %v135_v11 = vadd.f32 %v134_v53, %v29_v52  ;;  %v2198_v53 = vsub.f32 %v2169_v40, %v2185_v44  ;;  %v705_v40 = vsub.f32 %v2189_v47, %v704_v55 }
  0xd8   :  { %v1838_v56 = vpop.f32.mrf.mxu0  ;;  %v1849_v57 = vpop.f32.mrf.mxu1 }
  0xd9   :  { %v223_v18 = vadd.f32 %v222_v54, %v135_v11  ;;  %v714_v60 = vand.u32 4294901760, %v2198_v53  ;;  %v706_v4 = vand.u32 4294901760, %v705_v40 }
  0xda   :  { %v296_v58 = vpop.f32.mrf.mxu0  ;;  %v384_v59 = vpop.f32.mrf.mxu1 }
  0xdb   :  { %v297_v7 = vadd.f32 %v296_v58, %v211_v3 }
  0xdc   :  { %v1854_v62 = vpop.f32.mrf.mxu0  ;;  %v1865_v63 = vpop.f32.mrf.mxu1 }
  0xdd   :  { %v385_v14 = vadd.f32 %v384_v59, %v297_v7  ;;  %v695_v59 = vsub.f32 %v2182_v43, %v694_v34 }
  0xde   :  { %v303_v0 = vpop.f32.mrf.mxu0  ;;  %v392_v1 = vpop.f32.mrf.mxu1 }
  0xdf   :  { %v304_v15 = vadd.f32 %v303_v0, %v217_v10  ;;  %v696_v63 = vand.u32 4294901760, %v695_v59 }
  0xe0   :  { %v1857_v5 = vpop.f32.mrf.mxu0  ;;  %v1868_v6 = vpop.f32.mrf.mxu1 }
  0xe1   :  { %v393_v22 = vadd.f32 %v392_v1, %v304_v15  ;;  %v715_v1 = vsub.f32 %v2198_v53, %v714_v60 }
  0xe2   :  { %v310_v8 = vpop.f32.mrf.mxu0  ;;  %v400_v9 = vpop.f32.mrf.mxu1 }
  0xe3   :  { %v311_v23 = vadd.f32 %v310_v8, %v223_v18  ;;  %v716_v8 = vand.u32 4294901760, %v715_v1 }
  0xe4   :  { %v1860_v12 = vpop.f32.mrf.mxu0  ;;  %v1871_v13 = vpop.f32.mrf.mxu1 }
  0xe5   :  { %v401_v32 = vadd.f32 %v400_v9, %v311_v23  ;;  %v599_v12 = vpop.permute.xlu1 %598 }
  0xe6   :  { %v474_v16 = vpop.f32.mrf.mxu0  ;;  %v558_v17 = vpop.f32.mrf.mxu1 }
  0xe7   :  { %v475_v19 = vadd.f32 %v474_v16, %v385_v14 }
  0xe8   :  { %v1876_v20 = vpop.f32.mrf.mxu0  ;;  %v1887_v21 = vpop.f32.mrf.mxu1 }
  0xe9   :  { %v559_v24 = vadd.f32 %v558_v17, %v475_v19  ;;  %v589_v15 = vpop.permute.xlu1 %588 }
  0xea   :  { %v480_v25 = vpop.f32.mrf.mxu0  ;;  %v564_v26 = vpop.f32.mrf.mxu1 }
  0xeb   :  { %v481_v28 = vadd.f32 %v480_v25, %v393_v22  ;;  %v574_v38 = vmax.f32 %v559_v24, 0.0 }
  0xec   :  { %v1879_v30 = vpop.f32.mrf.mxu0  ;;  %v1890_v31 = vpop.f32.mrf.mxu1 }
  0xed   :  { %v565_v36 = vadd.f32 %v564_v26, %v481_v28  ;;  %v2193_v52 = vand.u32 4294901760, %v574_v38  ;;  %v584_v21 = vpop.permute.xlu1 %583  ;;  %v594_v28 = vpop.permute.xlu0 %593 }
  0xee   :  { %v486_v41 = vpop.f32.mrf.mxu0  ;;  %v570_v42 = vpop.f32.mrf.mxu1 }
  0xef   :  { %v575_v45 = vmax.f32 %v565_v36, 0.0  ;;  %v487_v46 = vadd.f32 %v486_v41, %v401_v32  ;;  %v764_v57 = vsub.f32 %v574_v38, %v2193_v52 }
  0xf0   :  { %v1882_v48 = vpop.f32.mrf.mxu0  ;;  %v1893_v49 = vpop.f32.mrf.mxu1 }
  0xf1   :  { %v2191_v50 = vand.u32 4294901760, %v575_v45  ;;  %v571_v51 = vadd.f32 %v570_v42, %v487_v46  ;;  %v765_v3 = vand.u32 4294901760, %v764_v57 }
  0xf3   :  { %v576_v54 = vmax.f32 %v571_v51, 0.0  ;;  %v757_v37 = vsub.f32 %v575_v45, %v2191_v50  ;;  %v766_v9 = vsub.f32 %v764_v57, %v765_v3 }
  0xf5   :  { %v612_v56 = vsel %vm610_vm4, %v576_v54, 0  ;;  %v758_v62 = vand.u32 4294901760, %v757_v37  ;;  %v767_v11 = vand.u32 4294901760, %v766_v9 }
  0xf6   :  { %v641_v58 = vand.u32 4294901760, %v612_v56 }
  0xf7   :  { %v759_v6 = vsub.f32 %v757_v37, %v758_v62 }
  0xf8   :  { %v750_v61 = vsub.f32 %v612_v56, %v641_v58  ;;  %1894 = vmatprep.subr.mxu0 %v641_v58 }
  0xf9   :  { %1895 = vmatpush3.msra.mxu0 %v641_v58  ;;  %v760_v10 = vand.u32 4294901760, %v759_v6 }
  0xfa   :  { %1896 = vmatprep.subr.mxu0 %v2191_v50  ;;  %v751_v0 = vand.u32 4294901760, %v750_v61 }
  0xfb   :  { %1897 = vmatpush3.msra.mxu0 %v2191_v50 }
  0xfc   :  { %1898 = vmatprep.subr.mxu0 %v2193_v52  ;;  %v752_v5 = vsub.f32 %v750_v61, %v751_v0 }
  0xfd   :  { %1899 = vmatpush3.msra.mxu0 %v2193_v52 }
  0xfe   :  { %1901 = vmatmul.mubr.f32.vlgmr.msra.gmra.mxu0 %v696_v63  ;;  %1918 = vmatprep.subr.mxu0 %v750_v61  ;;  %v753_v7 = vand.u32 4294901760, %v752_v5 }
  0xff   :  { %1919 = vmatpush3.msra.mxu0 %v750_v61  ;;  %1903 = vmatprep.mubr.f32.mxu0 %v706_v4 }
 0x100   :  { %1906 = vmatprep.subr.mxu1 %v753_v7  ;;  %1920 = vmatprep.subr.mxu0 %v757_v37 }
 0x101   :  { %1907 = vmatpush3.msra.mxu1 %v753_v7  ;;  %1921 = vmatpush3.msra.mxu0 %v757_v37 }
 0x102   :  { %1904 = vmatmul.mubr.f32.gmra.mxu0 %v716_v8  ;;  %1908 = vmatprep.subr.mxu1 %v760_v10 }
 0x103   :  { %1922 = vmatprep.subr.mxu0 %v764_v57  ;;  %1909 = vmatpush3.msra.mxu1 %v760_v10 }
 0x104   :  { %1923 = vmatpush3.msra.mxu0 %v764_v57  ;;  %1910 = vmatprep.subr.mxu1 %v767_v11 }
 0x105   :  { %1942 = vmatprep.subr.mxu0 %v751_v0  ;;  %1911 = vmatpush3.msra.mxu1 %v767_v11 }
 0x106   :  { %1924 = vmatprep.mubr.f32.mxu0 %v2157_v35  ;;  %1913 = vmatmul.mubr.f32.vlgmr.msra.gmra.mxu1 %v2175_v27  ;;  %v2069_v35 = vmov 30  }
 0x107   :  { %1925 = vmatmul.mubr.f32.vlgmr.msra.gmra.mxu0 %v2182_v43  ;;  %1930 = vmatprep.subr.mxu1 %v641_v58 }
 0x108   :  { %1943 = vmatpush3.msra.mxu0 %v751_v0  ;;  %1931 = vmatpush3.msra.mxu1 %v641_v58 }
 0x109   :  { %1944 = vmatprep.subr.mxu0 %v758_v62  ;;  %1932 = vmatprep.subr.mxu1 %v2191_v50 }
 0x10a   :  { %1945 = vmatpush3.msra.mxu0 %v758_v62  ;;  %1915 = vmatprep.mubr.f32.mxu1 %v2178_v29 }
 0x10b   :  { %1933 = vmatpush3.msra.mxu1 %v2191_v50  ;;  %1946 = vmatprep.subr.mxu0 %v765_v3 }
 0x10c   :  { %1916 = vmatmul.mubr.f32.gmra.mxu1 %v2185_v44  ;;  %1934 = vmatprep.subr.mxu1 %v2193_v52 }
 0x10d   :  { %1947 = vmatpush3.msra.mxu0 %v765_v3  ;;  %1935 = vmatpush3.msra.mxu1 %v2193_v52 }
 0x10e   :  { %1927 = vmatprep.mubr.f32.mxu0 %v2189_v47  ;;  %1954 = vmatprep.subr.mxu1 %v641_v58 }
 0x10f   :  { %1928 = vmatmul.mubr.f32.gmra.mxu0 %v2198_v53  ;;  %1936 = vmatprep.mubr.f32.mxu1 %v684_v39 }
 0x110   :  { %1937 = vmatmul.mubr.f32.vlgmr.msra.gmra.mxu1 %v694_v34  ;;  %1948 = vmatprep.mubr.f32.mxu0 %v2152_v33 }
 0x111   :  { %1955 = vmatpush3.msra.mxu1 %v641_v58  ;;  %1939 = vmatprep.mubr.f32.mxu1 %v704_v55 }
 0x112   :  { %1956 = vmatprep.subr.mxu1 %v2191_v50  ;;  %1966 = vmatprep.subr.mxu0 %v2065_v2 }
 0x113   :  { %1957 = vmatpush3.msra.mxu1 %v2191_v50  ;;  %1949 = vmatmul.mubr.f32.vlgmr.msra.gmra.mxu0 %v2175_v27 }
 0x114   :  { %1958 = vmatprep.subr.mxu1 %v2193_v52  ;;  %1940 = vmatmul.mubr.f32.gmra.mxu1 %v714_v60 }
 0x115   :  { %1959 = vmatpush3.msra.mxu1 %v2193_v52  ;;  %1951 = vmatprep.mubr.f32.mxu0 %v2178_v29 }
 0x116   :  { %1960 = vmatprep.mubr.f32.mxu1 %v2152_v33  ;;  %1977 = vmatprep.subr.mxu1 %v2065_v2  ;;  %v1219_v33 = vld [vmem:[%s2329_s0 + $0x38] sm:$0x1]  ;;  %s2070_s0 = smov [#allocation2]  }
 0x117   :  { %1952 = vmatmul.mubr.f32.gmra.mxu0 %v2185_v44  ;;  %2042 = vset.pattern.permute.xlu0 %v2069_v35  ;;  %v1226_v48 = vsel %vm1225_vm5, %v1219_v33, 0  ;;  %s1724_s26 = sshll.u32 %s2070_s0, 4  ;;  %s1725_s26 = int_to_ptr.vmem [resolvable:$true] %s1724_s26 }
 0x118   :  { %1961 = vmatmul.mubr.f32.vlgmr.msra.gmra.mxu1 %v2175_v27  ;;  %1974 = vmatprep.mubr.msk.f32.mxu0 %vm2066_vm1, %v2065_v2  ;;  %v2257_v37 = vand.u32 4294901760, %v1226_v48  ;;  %s2043_s27 = scalar_lea.vmem %s1725_s26, 16  ;;  %s2047_s28 = scalar_lea.vmem %s1725_s26, 32 }
 0x119   :  { %1963 = vmatprep.mubr.f32.mxu1 %v2178_v29  ;;  %1222 = vperm.xlu0 %2042, %v1219_v33   ;;  %p2044_p0 = scmp.ne.s32.totalorder %s1725_s26, %s2043_s27  ;;  %p2048_p1 = scmp.lt.s32.totalorder %s1725_s26, %s1725_s26 }
 0x11a   :  { %v2260_v0 = vsub.f32 %v1226_v48, %v2257_v37  ;;  %p2049_p2 = scmp.lt.s32.totalorder %s2047_s28, %s2043_s27 }
 0x11c   :  { %1964 = vmatmul.mubr.f32.gmra.mxu1 %v2185_v44  ;;  %v1303_v10 = vand.u32 4294901760, %v2260_v0  ;;  %p2050_p3 = por %p2049_p2, %p2048_p1 }
 0x11d   :  { %1985 = vmatprep.mubr.msk.f32.mxu1 %vm2066_vm1, %v2065_v2 }
 0x11e   :  { %p2051_p4 = pnand %p2050_p3, %p2044_p0 }
 0x1be   :  { %v1902_v39 = vpop.f32.mrf.mxu0 }
 0x1bf   :  { %v699_v20 = vadd.f32 %v1902_v39, %v589_v15 }
 0x1c0   :  { %v688_v13 = vpop.f32.mrf.mxu0 }
 0x1c1   :  { %v689_v26 = vadd.f32 %v688_v13, %v584_v21 }
 0x1c2   :  { %v1905_v14 = vpop.f32.mrf.mxu0 }
 0x1c3   :  { %v719_v24 = vadd.f32 %v1905_v14, %v599_v12  ;;  %v1304_v14 = vsub.f32 %v2260_v0, %v1303_v10 }
 0x1c4   :  { %v708_v16 = vpop.f32.mrf.mxu0 }
 0x1c5   :  { %v709_v38 = vadd.f32 %v708_v16, %v594_v28  ;;  %v1305_v21 = vand.u32 4294901760, %v1304_v14 }
 0x1c6   :  { %v1914_v17 = vpop.f32.mrf.mxu1 }
 0x1c7   :  { %v1926_v18 = vpop.f32.mrf.mxu0  ;;  %v811_v25 = vadd.f32 %v1914_v17, %v699_v20 }
 0x1c8   :  { %v804_v19 = vpop.f32.mrf.mxu1 }
 0x1c9   :  { %v900_v22 = vpop.f32.mrf.mxu0  ;;  %v805_v29 = vadd.f32 %v804_v19, %v689_v26  ;;  %v908_v32 = vadd.f32 %v1926_v18, %v811_v25 }
 0x1cb   :  { %v901_v43 = vadd.f32 %v900_v22, %v805_v29 }
 0x1cc   :  { %v1917_v23 = vpop.f32.mrf.mxu1 }
 0x1cd   :  { %v823_v36 = vadd.f32 %v1917_v23, %v719_v24 }
 0x1ce   :  { %v816_v27 = vpop.f32.mrf.mxu1 }
 0x1cf   :  { %v1929_v30 = vpop.f32.mrf.mxu0  ;;  %v817_v45 = vadd.f32 %v816_v27, %v709_v38 }
 0x1d0   :  { %v1938_v31 = vpop.f32.mrf.mxu1  ;;  %v922_v49 = vadd.f32 %v1929_v30, %v823_v36  ;;  %v1223_v36 = vpop.permute.xlu0 %1222 }
 0x1d1   :  { %v914_v41 = vpop.f32.mrf.mxu0  ;;  %v1006_v44 = vadd.f32 %v1938_v31, %v908_v32 }
 0x1d2   :  { %v997_v42 = vpop.f32.mrf.mxu1  ;;  %v915_v34 = vadd.f32 %v914_v41, %v817_v45 }
 0x1d3   :  { %v1950_v46 = vpop.f32.mrf.mxu0  ;;  %v998_v50 = vadd.f32 %v997_v42, %v901_v43 }
 0x1d4   :  { %v1941_v47 = vpop.f32.mrf.mxu1  ;;  %v1108_v53 = vadd.f32 %v1950_v46, %v1006_v44 }
 0x1d5   :  { %v1101_v51 = vpop.f32.mrf.mxu0  ;;  %v1022_v54 = vadd.f32 %v1941_v47, %v922_v49 }
 0x1d6   :  { %v1013_v52 = vpop.f32.mrf.mxu1  ;;  %v1102_v57 = vadd.f32 %v1101_v51, %v998_v50 }
 0x1d7   :  { %v1953_v55 = vpop.f32.mrf.mxu0  ;;  %v1014_v58 = vadd.f32 %v1013_v52, %v915_v34 }
 0x1d8   :  { %v1962_v56 = vpop.f32.mrf.mxu1  ;;  %v1120_v61 = vadd.f32 %v1953_v55, %v1022_v54 }
 0x1d9   :  { %v1200_v59 = vadd.f32 %v1962_v56, %v1108_v53  ;;  %v1113_v60 = vpop.f32.mrf.mxu0 }
 0x1da   :  { %v1193_v40 = vpop.f32.mrf.mxu1  ;;  %v1114_v3 = vadd.f32 %v1113_v60, %v1014_v58 }
 0x1db   :  { %v1216_v62 = vmax.f32 %v1200_v59, 0.0  ;;  %v1194_v63 = vadd.f32 %v1193_v40, %v1102_v57 }
 0x1dc   :  { %v1965_v1 = vpop.f32.mrf.mxu1 }
 0x1dd   :  { %v1215_v4 = vmax.f32 %v1194_v63, 0.0  ;;  %v1212_v5 = vadd.f32 %v1965_v1, %v1120_v61  ;;  %v2262_v6 = vand.u32 4294901760, %v1216_v62 }
 0x1de   :  { %v1205_v7 = vpop.f32.mrf.mxu1 }
 0x1df   :  { %v1218_v8 = vmax.f32 %v1212_v5, 0.0  ;;  %v1206_v9 = vadd.f32 %v1205_v7, %v1114_v3  ;;  %v2265_v11 = vand.u32 4294901760, %v1215_v4  ;;  %v1351_v39 = vsub.f32 %v1216_v62, %v2262_v6 }
 0x1e1   :  { %v1230_v33 = vsel %vm1228_vm6, %v1218_v8, 0  ;;  %v1217_v35 = vmax.f32 %v1206_v9, 0.0  ;;  %v1358_v15 = vsub.f32 %v1215_v4, %v2265_v11  ;;  %v1352_v18 = vand.u32 4294901760, %v1351_v39 }
 0x1e2   :  { %v2268_v12 = vand.u32 4294901760, %v1230_v33 }
 0x1e3   :  { %v2270_v13 = vand.u32 4294901760, %v1217_v35  ;;  %v1359_v22 = vand.u32 4294901760, %v1358_v15  ;;  %v1353_v25 = vsub.f32 %v1351_v39, %v1352_v18 }
 0x1e4   :  { %v1337_v16 = vsub.f32 %v1230_v33, %v2268_v12  ;;  %1967 = vmatpush3.msra.mxu0 %v2268_v12 }
 0x1e5   :  { %v1344_v17 = vsub.f32 %v1217_v35, %v2270_v13  ;;  %1968 = vmatprep.subr.mxu0 %v2065_v2  ;;  %v1360_v28 = vsub.f32 %v1358_v15, %v1359_v22  ;;  %v1354_v29 = vand.u32 4294901760, %v1353_v25 }
 0x1e6   :  { %v1338_v19 = vand.u32 4294901760, %v1337_v16  ;;  %1969 = vmatpush3.msra.mxu0 %v2270_v13 }
 0x1e7   :  { %v1345_v20 = vand.u32 4294901760, %v1344_v17  ;;  %1970 = vmatprep.subr.mxu0 %v2065_v2  ;;  %v1361_v30 = vand.u32 4294901760, %v1360_v28 }
 0x1e8   :  { %1971 = vmatpush3.msra.mxu0 %v2262_v6  ;;  %v1339_v23 = vsub.f32 %v1337_v16, %v1338_v19 }
 0x1e9   :  { %v1346_v24 = vsub.f32 %v1344_v17, %v1345_v20  ;;  %1972 = vmatprep.subr.mxu0 %v2065_v2 }
 0x1ea   :  { %1973 = vmatpush3.msra.mxu0 %v2265_v11  ;;  %v1340_v26 = vand.u32 4294901760, %v1339_v23 }
 0x1eb   :  { %1988 = vmatprep.subr.mxu0 %v2065_v2  ;;  %1975 = vmatmul.mubr.f32.vlgmr.msra.gmra.mxu0 %v1305_v21  ;;  %v1347_v27 = vand.u32 4294901760, %v1346_v24 }
 0x1ec   :  { %1978 = vmatpush3.msra.mxu1 %v1340_v26  ;;  %1989 = vmatpush3.msra.mxu0 %v1337_v16 }
 0x1ed   :  { %1979 = vmatprep.subr.mxu1 %v2065_v2  ;;  %1990 = vmatprep.subr.mxu0 %v2065_v2 }
 0x1ee   :  { %1980 = vmatpush3.msra.mxu1 %v1347_v27  ;;  %1991 = vmatpush3.msra.mxu0 %v1344_v17 }
 0x1ef   :  { %1981 = vmatprep.subr.mxu1 %v2065_v2  ;;  %1992 = vmatprep.subr.mxu0 %v2065_v2 }
 0x1f0   :  { %1982 = vmatpush3.msra.mxu1 %v1354_v29  ;;  %1993 = vmatpush3.msra.mxu0 %v1351_v39 }
 0x1f1   :  { %1983 = vmatprep.subr.mxu1 %v2065_v2  ;;  %1994 = vmatprep.subr.mxu0 %v2065_v2 }
 0x1f2   :  { %1984 = vmatpush3.msra.mxu1 %v1361_v30  ;;  %1995 = vmatpush3.msra.mxu0 %v1358_v15 }
 0x1f3   :  { %1996 = vmatprep.mubr.msk.f32.mxu0 %vm2066_vm1, %v2065_v2  ;;  %1999 = vmatprep.subr.mxu1 %v2065_v2 }
 0x1f4   :  { %2010 = vmatprep.subr.mxu0 %v2065_v2  ;;  %1986 = vmatmul.mubr.f32.vlgmr.msra.gmra.mxu1 %v2257_v37 }
 0x1f5   :  { %1997 = vmatmul.mubr.f32.vlgmr.msra.gmra.mxu0 %v2260_v0  ;;  %2000 = vmatpush3.msra.mxu1 %v2268_v12 }
 0x1f6   :  { %2011 = vmatpush3.msra.mxu0 %v1338_v19  ;;  %2001 = vmatprep.subr.mxu1 %v2065_v2 }
 0x1f7   :  { %2012 = vmatprep.subr.mxu0 %v2065_v2  ;;  %2002 = vmatpush3.msra.mxu1 %v2270_v13 }
 0x1f8   :  { %2013 = vmatpush3.msra.mxu0 %v1345_v20  ;;  %2003 = vmatprep.subr.mxu1 %v2065_v2 }
 0x1f9   :  { %2014 = vmatprep.subr.mxu0 %v2065_v2  ;;  %2004 = vmatpush3.msra.mxu1 %v2262_v6 }
 0x1fa   :  { %2015 = vmatpush3.msra.mxu0 %v1352_v18  ;;  %2005 = vmatprep.subr.mxu1 %v2065_v2 }
 0x1fb   :  { %2016 = vmatprep.subr.mxu0 %v2065_v2  ;;  %2006 = vmatpush3.msra.mxu1 %v2265_v11 }
 0x1fc   :  { %2017 = vmatpush3.msra.mxu0 %v1359_v22  ;;  %2007 = vmatprep.mubr.msk.f32.mxu1 %vm2066_vm1, %v2065_v2 }
 0x1fd   :  { %2021 = vmatprep.subr.mxu1 %v2065_v2  ;;  %2008 = vmatmul.mubr.f32.vlgmr.msra.gmra.mxu1 %v1303_v10 }
 0x1fe   :  { %2022 = vmatpush3.msra.mxu1 %v2268_v12  ;;  %2018 = vmatprep.mubr.msk.f32.mxu0 %vm2066_vm1, %v2065_v2 }
 0x1ff   :  { %2023 = vmatprep.subr.mxu1 %v2065_v2  ;;  %2019 = vmatmul.mubr.f32.vlgmr.msra.gmra.mxu0 %v2257_v37 }
 0x200   :  { %2024 = vmatpush3.msra.mxu1 %v2270_v13  ;;  %2029 = vmatprep.mubr.msk.f32.mxu1 %vm2066_vm1, %v2065_v2 }
 0x201   :  { %2025 = vmatprep.subr.mxu1 %v2065_v2 }
 0x202   :  { %2026 = vmatpush3.msra.mxu1 %v2262_v6 }
 0x203   :  { %2027 = vmatprep.subr.mxu1 %v2065_v2 }
 0x204   :  { %2028 = vmatpush3.msra.mxu1 %v2265_v11 }
 0x205   :  { %2030 = vmatmul.mubr.f32.vlgmr.msra.gmra.mxu1 %v2257_v37 }
 0x2ab   :  { %v1307_v31 = vpop.f32.mrf.mxu0 }
 0x2ac   :  { %v1308_v42 = vadd.f32 %v1307_v31, %v1223_v36 }
 0x2ad   :  { %v1976_v32 = vpop.f32.mrf.mxu0 }
 0x2b4   :  { %v1398_v38 = vpop.f32.mrf.mxu1 }
 0x2b5   :  { %v1478_v41 = vpop.f32.mrf.mxu0  ;;  %v1399_v45 = vadd.f32 %v1398_v38, %v1308_v42 }
 0x2b6   :  { %v1987_v43 = vpop.f32.mrf.mxu1 }
 0x2b7   :  { %v1998_v44 = vpop.f32.mrf.mxu0  ;;  %v1479_v47 = vadd.f32 %v1478_v41, %v1399_v45 }
 0x2bd   :  { %v1555_v46 = vpop.f32.mrf.mxu1 }
 0x2be   :  { %v1556_v50 = vadd.f32 %v1555_v46, %v1479_v47 }
 0x2bf   :  { %v2009_v48 = vpop.f32.mrf.mxu1  ;;  %v1638_v49 = vpop.f32.mrf.mxu0 }
 0x2c0   :  { %v1639_v2 = vadd.f32 %v1638_v49, %v1556_v50 }
 0x2c1   :  { %v2020_v51 = vpop.f32.mrf.mxu0 }
 0x2c5   :  { %v1713_v52 = vpop.f32.mrf.mxu1 }
 0x2c6   :  { %v1714_v34 = vadd.f32 %v1713_v52, %v1639_v2 }
 0x2c7   :  { %v2031_v53 = vpop.f32.mrf.mxu1 }
 0x2c8   :  { %1717 = vst [vmem:[#allocation2] sm:$0x1] %v1714_v34 }
 0x2c9   :  { %2054 = shalt.err (!%p2051_p4)
}
 0x2ca   :  { %1727 = dma.vmem_to_hbm [thread:$0]  %s1725_s26, 16, %s2331_s2, [#allocation3]  }
 0x2cb   :  { %2063 = dma.done.wait [#allocation3], 16  }
 0x2cc   :  { %2064 = vsyncadd [#allocation3], 4294967280 }
 0x2cd   :  { %1731 = vsyncpa [#allocation3], 1 }

</bundles_post_ra>
